<compile_context>
chip_gen: v7x
topology: tpu7x:2x2x1
jax: 0.10.0
libtpu: 0.0.40
codegen_flags: <defaults>
</compile_context>

<pallas_src>
import functools

import jax
import jax.numpy as jnp
from jax.experimental import pallas as pl
from jax.experimental.pallas import tpu as pltpu

LN_EPS = 1e-5


def _row_tile(n, cap=512):
    """Largest row tile <= cap that divides n (full n if n <= cap)."""
    if n <= cap:
        return n
    for t in (512, 256, 128, 64, 32, 16, 8):
        if n % t == 0:
            return t
    return n


# ---------------------------------------------------------------------------
# Kernel 1: fused QKV projection   (tm, D) @ (D, 3D) + b   (bf16 MXU, f32 acc)
# ---------------------------------------------------------------------------
def _qkv_proj_kernel(x_ref, w_ref, b_ref, o_ref):
    x = x_ref[...].astype(jnp.bfloat16)
    w = w_ref[...].astype(jnp.bfloat16)
    acc = jnp.dot(x, w, preferred_element_type=jnp.float32)
    acc = acc + b_ref[...].astype(jnp.float32)
    o_ref[...] = acc.astype(o_ref.dtype)


# ---------------------------------------------------------------------------
# Kernel 2: scaled-dot-product attention for one (batch*head, q-tile)
# ---------------------------------------------------------------------------
def _attn_kernel(q_ref, k_ref, v_ref, o_ref, *, scale):
    q = q_ref[...]                                    # (tq, dk) bf16
    k = k_ref[...]                                    # (T,  dk) bf16
    v = v_ref[...]                                    # (T,  dk) bf16
    s = jax.lax.dot_general(q, k, (((1,), (1,)), ((), ())),
                            preferred_element_type=jnp.float32) * scale
    s = s - jnp.max(s, axis=-1, keepdims=True)
    p = jnp.exp(s)
    p = p * pl.reciprocal(jnp.sum(p, axis=-1, keepdims=True), approx=True)
    ctx = jnp.dot(p.astype(jnp.bfloat16), v,
                  preferred_element_type=jnp.float32)
    o_ref[...] = ctx.astype(o_ref.dtype)


# ---------------------------------------------------------------------------
# Kernel 3: output projection + residual + LayerNorm (f32 epilogue)
# ---------------------------------------------------------------------------
def _out_ln_kernel(ctx_ref, x_ref, w_ref, vecs_ref, o_ref):
    w = w_ref[...].astype(jnp.bfloat16)
    out = jnp.dot(ctx_ref[...], w, preferred_element_type=jnp.float32)
    vecs = vecs_ref[...].astype(jnp.float32)          # (3, D): b_out/gamma/beta
    b_out, gamma, beta = vecs[0:1], vecs[1:2], vecs[2:3]
    y = x_ref[...].astype(jnp.float32) + out + b_out
    mu = jnp.mean(y, axis=-1, keepdims=True)
    var = jnp.mean((y - mu) ** 2, axis=-1, keepdims=True)
    yn = (y - mu) * jax.lax.rsqrt(var + LN_EPS)
    o_ref[...] = (yn * gamma + beta).astype(o_ref.dtype)


def mhsa_forward(x, params, num_heads):
    """Pallas implementation of CustomMultiHeadSelfAttention.forward (eval)."""
    B, T, D = x.shape
    H = num_heads
    dk = D // H
    M = B * T

    wqkv, bqkv = params["w_qkv"], params["b_qkv"]      # (D, 3D), (3D,)
    wout, bout = params["w_out"], params["b_out"]      # (D, D),  (D,)
    gamma, beta = params["gamma"], params["beta"]      # (D,),    (D,)

    x2d = x.reshape(M, D)
    tm = _row_tile(M)

    # --- 1. fused QKV projection: one lane-dense (M, D) x (D, 3D) matmul ----
    qkv = pl.pallas_call(
        _qkv_proj_kernel,
        out_shape=jax.ShapeDtypeStruct((M, 3 * D), jnp.bfloat16),
        grid=(M // tm,),
        in_specs=[
            pl.BlockSpec((tm, D), lambda i: (i, 0)),
            pl.BlockSpec((D, 3 * D), lambda i: (0, 0)),
            pl.BlockSpec((1, 3 * D), lambda i: (0, 0)),
        ],
        out_specs=pl.BlockSpec((tm, 3 * D), lambda i: (i, 0)),
        compiler_params=pltpu.CompilerParams(
            dimension_semantics=("parallel",)),
    )(x2d, wqkv, bqkv.reshape(1, 3 * D))

    # Wrapper-side layout plumbing (cheap XLA reshapes/transposes): split
    # Q/K/V and move heads into a leading batch axis -> (B*H, T, dk).
    qkv5 = qkv.reshape(B, T, 3, H, dk).transpose(2, 0, 3, 1, 4)  # (3,B,H,T,dk)
    q = qkv5[0].reshape(B * H, T, dk)
    k = qkv5[1].reshape(B * H, T, dk)
    v = qkv5[2].reshape(B * H, T, dk)

    # --- 2. attention: grid over (batch*head, q-tile), full-length keys -----
    tq = _row_tile(T, cap=256)
    ctx = pl.pallas_call(
        functools.partial(_attn_kernel, scale=dk ** -0.5),
        out_shape=jax.ShapeDtypeStruct((B * H, T, dk), jnp.bfloat16),
        grid=(B * H, T // tq),
        in_specs=[
            pl.BlockSpec((None, tq, dk), lambda n, qi: (n, qi, 0)),
            pl.BlockSpec((None, T, dk), lambda n, qi: (n, 0, 0)),
            pl.BlockSpec((None, T, dk), lambda n, qi: (n, 0, 0)),
        ],
        out_specs=pl.BlockSpec((None, tq, dk), lambda n, qi: (n, qi, 0)),
        compiler_params=pltpu.CompilerParams(
            dimension_semantics=("parallel", "parallel")),
    )(q, k, v)

    # Head concat back to (M, D) lanes (layout plumbing).
    ctx2d = ctx.reshape(B, H, T, dk).transpose(0, 2, 1, 3).reshape(M, D)

    # --- 3. output projection + residual + LayerNorm -------------------------
    vecs = jnp.stack([bout, gamma, beta], axis=0)      # (3, D) lane-dense rows
    y2d = pl.pallas_call(
        _out_ln_kernel,
        out_shape=jax.ShapeDtypeStruct((M, D), x.dtype),
        grid=(M // tm,),
        in_specs=[
            pl.BlockSpec((tm, D), lambda i: (i, 0)),
            pl.BlockSpec((tm, D), lambda i: (i, 0)),
            pl.BlockSpec((D, D), lambda i: (0, 0)),
            pl.BlockSpec((3, D), lambda i: (0, 0)),
        ],
        out_specs=pl.BlockSpec((tm, D), lambda i: (i, 0)),
        compiler_params=pltpu.CompilerParams(
            dimension_semantics=("parallel",)),
    )(ctx2d, x2d, wout, vecs)

    return y2d.reshape(B, T, D)


def mhsa_reference(x, params, num_heads):
    """Pure-JAX mirror of the PyTorch forward (dropout = identity)."""
    B, T, D = x.shape
    H = num_heads
    dk = D // H
    qkv = x @ params["w_qkv"] + params["b_qkv"]
    q, k, v = qkv[..., :D], qkv[..., D:2 * D], qkv[..., 2 * D:]
    split = lambda a: a.reshape(B, T, H, dk).transpose(0, 2, 1, 3)
    q, k, v = split(q), split(k), split(v)
    s = (q @ jnp.swapaxes(k, -1, -2)) / (dk ** 0.5)
    p = jax.nn.softmax(s, axis=-1)
    ctx = (p @ v).transpose(0, 2, 1, 3).reshape(B, T, D)
    out = ctx @ params["w_out"] + params["b_out"]
    y = x + out
    mu = y.mean(-1, keepdims=True)
    var = ((y - mu) ** 2).mean(-1, keepdims=True)
    return (y - mu) / jnp.sqrt(var + LN_EPS) * params["gamma"] + params["beta"]


if __name__ == "__main__":
    B, T, D, H = 2, 8, 32, 4

    key = jax.random.PRNGKey(0)
    kx, kw, kb, ko, kbo = jax.random.split(key, 5)
    x = jax.random.normal(kx, (B, T, D), jnp.float32)
    params = {
        "w_qkv": jax.random.normal(kw, (D, 3 * D), jnp.float32) * 0.1,
        "b_qkv": jax.random.normal(kb, (3 * D,), jnp.float32) * 0.05,
        "w_out": jax.random.normal(ko, (D, D), jnp.float32) * 0.1,
        "b_out": jax.random.normal(kbo, (D,), jnp.float32) * 0.05,
        "gamma": jnp.ones((D,), jnp.float32),
        "beta": jnp.zeros((D,), jnp.float32),
    }

    fwd = jax.jit(functools.partial(mhsa_forward, num_heads=H))
    out = jax.block_until_ready(fwd(x, params))

    ref = mhsa_reference(x, params, H)
    assert out.shape == (B, T, D)
    assert bool(jnp.all(jnp.isfinite(out)))
    # bf16 MXU operands (f32 accumulation) vs. pure-f32 reference.
    assert bool(jnp.allclose(out, ref, atol=2e-2, rtol=2e-2)), \
        float(jnp.max(jnp.abs(out - ref)))
    print("KERNEL_OK")
</pallas_src>

<mosaic_0001>
module attributes {stable_mosaic.version = 11 : i64} {
  func.func @_qkv_proj_kernel(%arg0: i32, %arg1: memref<16x32xf32, #tpu.memory_space<vmem>>, %arg2: memref<32x96xf32, #tpu.memory_space<vmem>>, %arg3: memref<1x96xf32, #tpu.memory_space<vmem>>, %arg4: memref<16x96xbf16, #tpu.memory_space<vmem>>) attributes {dimension_semantics = [#tpu.dimension_semantics<parallel>], iteration_bounds = array<i64: 1>, scalar_prefetch = 0 : i64, scratch_operands = 0 : i64, tpu.core_type = #tpu.core_type<tc>, window_params = [{transform_indices = @transform_0, window_bounds = array<i64: 16, 32>}, {pipeline_mode = #tpu.pipeline_mode<synchronous>, transform_indices = @transform_1, window_bounds = array<i64: 32, 96>}, {pipeline_mode = #tpu.pipeline_mode<synchronous>, transform_indices = @transform_2, window_bounds = array<i64: 1, 96>}, {transform_indices = @transform_3, window_bounds = array<i64: 16, 96>}]} {
    %c0 = arith.constant 0 : index
    %c0_0 = arith.constant 0 : index
    %0 = vector.load %arg1[%c0, %c0_0] : memref<16x32xf32, #tpu.memory_space<vmem>>, vector<16x32xf32>
    %1 = arith.truncf %0 : vector<16x32xf32> to vector<16x32xbf16>
    %c0_1 = arith.constant 0 : index
    %c0_2 = arith.constant 0 : index
    %2 = vector.load %arg2[%c0_1, %c0_2] : memref<32x96xf32, #tpu.memory_space<vmem>>, vector<32x96xf32>
    %3 = arith.truncf %2 : vector<32x96xf32> to vector<32x96xbf16>
    %cst = arith.constant dense<0.000000e+00> : vector<16x96xf32>
    %4 = tpu.matmul %1, %3, %cst {dimension_numbers = #tpu.dot_dimension_numbers<[1], [0], [0], [1], [0, 0, 1, 1], [], []>} : vector<16x32xbf16>, vector<32x96xbf16>, vector<16x96xf32> -> vector<16x96xf32>
    %c0_3 = arith.constant 0 : index
    %c0_4 = arith.constant 0 : index
    %5 = vector.load %arg3[%c0_3, %c0_4] : memref<1x96xf32, #tpu.memory_space<vmem>>, vector<1x96xf32>
    %6 = vector.broadcast %5 : vector<1x96xf32> to vector<16x96xf32>
    %7 = arith.addf %4, %6 : vector<16x96xf32>
    %8 = arith.truncf %7 : vector<16x96xf32> to vector<16x96xbf16>
    %c0_5 = arith.constant 0 : index
    %c0_6 = arith.constant 0 : index
    %9 = vector.load %arg4[%c0_5, %c0_6] : memref<16x96xbf16, #tpu.memory_space<vmem>>, vector<16x96xbf16>
    tpu.vector_store %arg4[%c0_5, %c0_6], %8 {strides = array<i32>} : memref<16x96xbf16, #tpu.memory_space<vmem>>, vector<16x96xbf16>,
    return
  }
  func.func @transform_0(%arg0: i32) -> (i32, i32) {
    %c0_i32 = arith.constant 0 : i32
    %c0_i32_0 = arith.constant 0 : i32
    return %arg0, %c0_i32 : i32, i32
  }
  func.func @transform_1(%arg0: i32) -> (i32, i32) {
    %c0_i32 = arith.constant 0 : i32
    %c0_i32_0 = arith.constant 0 : i32
    %c0_i32_1 = arith.constant 0 : i32
    return %c0_i32, %c0_i32_0 : i32, i32
  }
  func.func @transform_2(%arg0: i32) -> (i32, i32) {
    %c0_i32 = arith.constant 0 : i32
    %c0_i32_0 = arith.constant 0 : i32
    %c0_i32_1 = arith.constant 0 : i32
    return %c0_i32, %c0_i32_0 : i32, i32
  }
  func.func @transform_3(%arg0: i32) -> (i32, i32) {
    %c0_i32 = arith.constant 0 : i32
    %c0_i32_0 = arith.constant 0 : i32
    return %arg0, %c0_i32 : i32, i32
  }
}

module attributes {stable_mosaic.version = 11 : i64} {
  func.func @_attn_kernel(%arg0: i32, %arg1: i32, %arg2: memref<1x8x8xbf16, #tpu.memory_space<vmem>>, %arg3: memref<1x8x8xbf16, #tpu.memory_space<vmem>>, %arg4: memref<1x8x8xbf16, #tpu.memory_space<vmem>>, %arg5: memref<1x8x8xbf16, #tpu.memory_space<vmem>>) attributes {dimension_semantics = [#tpu.dimension_semantics<parallel>, #tpu.dimension_semantics<parallel>], iteration_bounds = array<i64: 8, 1>, scalar_prefetch = 0 : i64, scratch_operands = 0 : i64, tpu.core_type = #tpu.core_type<tc>, window_params = [{transform_indices = @transform_0, window_bounds = array<i64: 1, 8, 8>}, {transform_indices = @transform_1, window_bounds = array<i64: 1, 8, 8>}, {transform_indices = @transform_2, window_bounds = array<i64: 1, 8, 8>}, {transform_indices = @transform_3, window_bounds = array<i64: 1, 8, 8>}]} {
    %c0 = arith.constant 0 : index
    %c0_0 = arith.constant 0 : index
    %c0_1 = arith.constant 0 : index
    %0 = vector.load %arg2[%c0, %c0_0, %c0_1] : memref<1x8x8xbf16, #tpu.memory_space<vmem>>, vector<1x8x8xbf16>
    %1 = vector.shape_cast %0 : vector<1x8x8xbf16> to vector<8x8xbf16>
    %c0_2 = arith.constant 0 : index
    %c0_3 = arith.constant 0 : index
    %c0_4 = arith.constant 0 : index
    %2 = vector.load %arg3[%c0_2, %c0_3, %c0_4] : memref<1x8x8xbf16, #tpu.memory_space<vmem>>, vector<1x8x8xbf16>
    %3 = vector.shape_cast %2 : vector<1x8x8xbf16> to vector<8x8xbf16>
    %c0_5 = arith.constant 0 : index
    %c0_6 = arith.constant 0 : index
    %c0_7 = arith.constant 0 : index
    %4 = vector.load %arg4[%c0_5, %c0_6, %c0_7] : memref<1x8x8xbf16, #tpu.memory_space<vmem>>, vector<1x8x8xbf16>
    %5 = vector.shape_cast %4 : vector<1x8x8xbf16> to vector<8x8xbf16>
    %cst = arith.constant dense<0.000000e+00> : vector<8x8xf32>
    %6 = tpu.matmul %1, %3, %cst {dimension_numbers = #tpu.dot_dimension_numbers<[1], [1], [0], [0], [0, 0, 1, 0], [], []>} : vector<8x8xbf16>, vector<8x8xbf16>, vector<8x8xf32> -> vector<8x8xf32>
    %cst_8 = arith.constant 0.353553385 : f32
    %7 = vector.broadcast %cst_8 : f32 to vector<8x8xf32>
    %8 = arith.mulf %6, %7 : vector<8x8xf32>
    %cst_9 = arith.constant dense<0xFF800000> : vector<8xf32>
    %9 = vector.multi_reduction <maximumf>, %8, %cst_9 [1] : vector<8x8xf32> to vector<8xf32>
    %10 = vector.shape_cast %9 : vector<8xf32> to vector<8x1xf32>
    %11 = vector.broadcast %10 : vector<8x1xf32> to vector<8x8xf32>
    %12 = arith.subf %8, %11 : vector<8x8xf32>
    %13 = math.exp %12 : vector<8x8xf32>
    %cst_10 = arith.constant dense<0.000000e+00> : vector<8xf32>
    %14 = vector.multi_reduction <add>, %13, %cst_10 [1] : vector<8x8xf32> to vector<8xf32>
    %15 = vector.shape_cast %14 : vector<8xf32> to vector<8x1xf32>
    %16 = tpu.reciprocal %15 {approx = true} : vector<8x1xf32> -> vector<8x1xf32>
    %17 = vector.broadcast %16 : vector<8x1xf32> to vector<8x8xf32>
    %18 = arith.mulf %13, %17 : vector<8x8xf32>
    %19 = arith.truncf %18 : vector<8x8xf32> to vector<8x8xbf16>
    %cst_11 = arith.constant dense<0.000000e+00> : vector<8x8xf32>
    %20 = tpu.matmul %19, %5, %cst_11 {dimension_numbers = #tpu.dot_dimension_numbers<[1], [0], [0], [1], [0, 0, 1, 1], [], []>} : vector<8x8xbf16>, vector<8x8xbf16>, vector<8x8xf32> -> vector<8x8xf32>
    %21 = arith.truncf %20 : vector<8x8xf32> to vector<8x8xbf16>
    %c0_12 = arith.constant 0 : index
    %c0_13 = arith.constant 0 : index
    %c0_14 = arith.constant 0 : index
    %22 = vector.load %arg5[%c0_12, %c0_13, %c0_14] : memref<1x8x8xbf16, #tpu.memory_space<vmem>>, vector<1x8x8xbf16>
    %23 = vector.shape_cast %22 : vector<1x8x8xbf16> to vector<8x8xbf16>
    %24 = vector.shape_cast %21 : vector<8x8xbf16> to vector<1x8x8xbf16>
    tpu.vector_store %arg5[%c0_12, %c0_13, %c0_14], %24 {strides = array<i32>} : memref<1x8x8xbf16, #tpu.memory_space<vmem>>, vector<1x8x8xbf16>,
    return
  }
  func.func @transform_0(%arg0: i32, %arg1: i32) -> (i32, i32, i32) {
    %c0_i32 = arith.constant 0 : i32
    %c0_i32_0 = arith.constant 0 : i32
    return %arg0, %arg1, %c0_i32 : i32, i32, i32
  }
  func.func @transform_1(%arg0: i32, %arg1: i32) -> (i32, i32, i32) {
    %c0_i32 = arith.constant 0 : i32
    %c0_i32_0 = arith.constant 0 : i32
    %c0_i32_1 = arith.constant 0 : i32
    return %arg0, %c0_i32, %c0_i32_0 : i32, i32, i32
  }
  func.func @transform_2(%arg0: i32, %arg1: i32) -> (i32, i32, i32) {
    %c0_i32 = arith.constant 0 : i32
    %c0_i32_0 = arith.constant 0 : i32
    %c0_i32_1 = arith.constant 0 : i32
    return %arg0, %c0_i32, %c0_i32_0 : i32, i32, i32
  }
  func.func @transform_3(%arg0: i32, %arg1: i32) -> (i32, i32, i32) {
    %c0_i32 = arith.constant 0 : i32
    %c0_i32_0 = arith.constant 0 : i32
    return %arg0, %arg1, %c0_i32 : i32, i32, i32
  }
}

module attributes {stable_mosaic.version = 11 : i64} {
  func.func @_out_ln_kernel(%arg0: i32, %arg1: memref<16x32xbf16, #tpu.memory_space<vmem>>, %arg2: memref<16x32xf32, #tpu.memory_space<vmem>>, %arg3: memref<32x32xf32, #tpu.memory_space<vmem>>, %arg4: memref<3x32xf32, #tpu.memory_space<vmem>>, %arg5: memref<16x32xf32, #tpu.memory_space<vmem>>) attributes {dimension_semantics = [#tpu.dimension_semantics<parallel>], iteration_bounds = array<i64: 1>, scalar_prefetch = 0 : i64, scratch_operands = 0 : i64, tpu.core_type = #tpu.core_type<tc>, window_params = [{transform_indices = @transform_0, window_bounds = array<i64: 16, 32>}, {transform_indices = @transform_1, window_bounds = array<i64: 16, 32>}, {pipeline_mode = #tpu.pipeline_mode<synchronous>, transform_indices = @transform_2, window_bounds = array<i64: 32, 32>}, {pipeline_mode = #tpu.pipeline_mode<synchronous>, transform_indices = @transform_3, window_bounds = array<i64: 3, 32>}, {transform_indices = @transform_4, window_bounds = array<i64: 16, 32>}]} {
    %c0 = arith.constant 0 : index
    %c0_0 = arith.constant 0 : index
    %0 = vector.load %arg3[%c0, %c0_0] : memref<32x32xf32, #tpu.memory_space<vmem>>, vector<32x32xf32>
    %1 = arith.truncf %0 : vector<32x32xf32> to vector<32x32xbf16>
    %c0_1 = arith.constant 0 : index
    %c0_2 = arith.constant 0 : index
    %2 = vector.load %arg1[%c0_1, %c0_2] : memref<16x32xbf16, #tpu.memory_space<vmem>>, vector<16x32xbf16>
    %cst = arith.constant dense<0.000000e+00> : vector<16x32xf32>
    %3 = tpu.matmul %2, %1, %cst {dimension_numbers = #tpu.dot_dimension_numbers<[1], [0], [0], [1], [0, 0, 1, 1], [], []>} : vector<16x32xbf16>, vector<32x32xbf16>, vector<16x32xf32> -> vector<16x32xf32>
    %c0_3 = arith.constant 0 : index
    %c0_4 = arith.constant 0 : index
    %4 = vector.load %arg4[%c0_3, %c0_4] : memref<3x32xf32, #tpu.memory_space<vmem>>, vector<3x32xf32>
    %5 = vector.extract_strided_slice %4 {offsets = [0, 0], sizes = [1, 32], strides = [1, 1]} : vector<3x32xf32> to vector<1x32xf32>
    %6 = vector.extract_strided_slice %4 {offsets = [1, 0], sizes = [1, 32], strides = [1, 1]} : vector<3x32xf32> to vector<1x32xf32>
    %7 = vector.extract_strided_slice %4 {offsets = [2, 0], sizes = [1, 32], strides = [1, 1]} : vector<3x32xf32> to vector<1x32xf32>
    %c0_5 = arith.constant 0 : index
    %c0_6 = arith.constant 0 : index
    %8 = vector.load %arg2[%c0_5, %c0_6] : memref<16x32xf32, #tpu.memory_space<vmem>>, vector<16x32xf32>
    %9 = arith.addf %8, %3 : vector<16x32xf32>
    %10 = vector.broadcast %5 : vector<1x32xf32> to vector<16x32xf32>
    %11 = arith.addf %9, %10 : vector<16x32xf32>
    %cst_7 = arith.constant dense<0.000000e+00> : vector<16xf32>
    %12 = vector.multi_reduction <add>, %11, %cst_7 [1] : vector<16x32xf32> to vector<16xf32>
    %13 = vector.shape_cast %12 : vector<16xf32> to vector<16x1xf32>
    %cst_8 = arith.constant 3.200000e+01 : f32
    %14 = vector.broadcast %cst_8 : f32 to vector<16x1xf32>
    %15 = arith.divf %13, %14 : vector<16x1xf32>
    %16 = vector.broadcast %15 : vector<16x1xf32> to vector<16x32xf32>
    %17 = arith.subf %11, %16 : vector<16x32xf32>
    %18 = arith.mulf %17, %17 : vector<16x32xf32>
    %cst_9 = arith.constant dense<0.000000e+00> : vector<16xf32>
    %19 = vector.multi_reduction <add>, %18, %cst_9 [1] : vector<16x32xf32> to vector<16xf32>
    %20 = vector.shape_cast %19 : vector<16xf32> to vector<16x1xf32>
    %cst_10 = arith.constant 3.200000e+01 : f32
    %21 = vector.broadcast %cst_10 : f32 to vector<16x1xf32>
    %22 = arith.divf %20, %21 : vector<16x1xf32>
    %23 = vector.broadcast %15 : vector<16x1xf32> to vector<16x32xf32>
    %24 = arith.subf %11, %23 : vector<16x32xf32>
    %cst_11 = arith.constant 9.99999974E-6 : f32
    %25 = vector.broadcast %cst_11 : f32 to vector<16x1xf32>
    %26 = arith.addf %22, %25 : vector<16x1xf32>
    %27 = math.rsqrt %26 : vector<16x1xf32>
    %28 = vector.broadcast %27 : vector<16x1xf32> to vector<16x32xf32>
    %29 = arith.mulf %24, %28 : vector<16x32xf32>
    %30 = vector.broadcast %6 : vector<1x32xf32> to vector<16x32xf32>
    %31 = arith.mulf %29, %30 : vector<16x32xf32>
    %32 = vector.broadcast %7 : vector<1x32xf32> to vector<16x32xf32>
    %33 = arith.addf %31, %32 : vector<16x32xf32>
    %c0_12 = arith.constant 0 : index
    %c0_13 = arith.constant 0 : index
    %34 = vector.load %arg5[%c0_12, %c0_13] : memref<16x32xf32, #tpu.memory_space<vmem>>, vector<16x32xf32>
    tpu.vector_store %arg5[%c0_12, %c0_13], %33 {strides = array<i32>} : memref<16x32xf32, #tpu.memory_space<vmem>>, vector<16x32xf32>,
    return
  }
  func.func @transform_0(%arg0: i32) -> (i32, i32) {
    %c0_i32 = arith.constant 0 : i32
    %c0_i32_0 = arith.constant 0 : i32
    return %arg0, %c0_i32 : i32, i32
  }
  func.func @transform_1(%arg0: i32) -> (i32, i32) {
    %c0_i32 = arith.constant 0 : i32
    %c0_i32_0 = arith.constant 0 : i32
    return %arg0, %c0_i32 : i32, i32
  }
  func.func @transform_2(%arg0: i32) -> (i32, i32) {
    %c0_i32 = arith.constant 0 : i32
    %c0_i32_0 = arith.constant 0 : i32
    %c0_i32_1 = arith.constant 0 : i32
    return %c0_i32, %c0_i32_0 : i32, i32
  }
  func.func @transform_3(%arg0: i32) -> (i32, i32) {
    %c0_i32 = arith.constant 0 : i32
    %c0_i32_0 = arith.constant 0 : i32
    %c0_i32_1 = arith.constant 0 : i32
    return %c0_i32, %c0_i32_0 : i32, i32
  }
  func.func @transform_4(%arg0: i32) -> (i32, i32) {
    %c0_i32 = arith.constant 0 : i32
    %c0_i32_0 = arith.constant 0 : i32
    return %arg0, %c0_i32 : i32, i32
  }
}

</mosaic_0001>

<bundles_post_ra>
// kernel: mhsa_forward.3
= control target key start
LH: loop header
LB: loop body
LE: loop exit
PB: predicated region body
PF: predicated region fallthrough
CT: control target
= control target key end

     0   :  { %8 = vsyncpa [#allocation3], 0  ;;  %s152_s12 = smov [#allocation2]   ;;  %s204_s0 = inlined_call_operand.vmem [shape: f32[16,32], index: 0, kind: input, shape index: {}]   ;;  %s205_s1 = inlined_call_operand.hbm [shape: f32[32,96], index: 1, kind: input, shape index: {}]   ;;  %s206_s2 = inlined_call_operand.vmem [shape: f32[1,96], index: 2, kind: input, shape index: {}]   ;;  %s207_s3 = inlined_call_operand.vmem [shape: bf16[16,96], index: 3, kind: output, shape index: {}]  }
   0x1   :  { %s16_s13 = sshll.u32 %s152_s12, 4  ;;  %s128_s16 = scalar_lea.hbm %s205_s1, 512  ;;  %s17_s13 = int_to_ptr.vmem [resolvable:$true] %s16_s13 }
   0x2   :  { %p129_p0 = scmp.ne.s32.totalorder %s205_s1, %s128_s16  ;;  %p132_p1 = scmp.lt.u32.totalorder %s128_s16, %s205_s1 }
   0x4   :  { %p134_p2 = pnand %p132_p1, %p129_p0 }
   0x6   :  { %137 = shalt.err (!%p134_p2)
}
   0x7   :  { %s138_s21 = scalar_lea.vmem %s17_s13, 512  ;;  %p143_p4 = scmp.lt.s32.totalorder %s17_s13, %s17_s13 }
   0x8   :  { %p139_p3 = scmp.ne.s32.totalorder %s17_s13, %s138_s21  ;;  %p144_p5 = scmp.lt.s32.totalorder %s138_s21, %s138_s21 }
   0xa   :  { %p145_p6 = por %p144_p5, %p143_p4 }
   0xc   :  { %p146_p7 = pnand %p145_p6, %p139_p3 }
   0xe   :  { %149 = shalt.err (!%p146_p7)
}
   0xf   :  { %s153_s22 = smov 128   ;;  %s154_s23 = smov 8  }
  0x10   :  { %22 = dma.hbm_to_vmem [thread:$0]  %s205_s1, 512, %s17_s13, [#allocation3], %s153_s22, %s153_s22, %s154_s23  }
  0x11   :  { %150 = dma.done.wait [#allocation3], 512  }
  0x12   :  { %151 = vsyncadd [#allocation3], 4294966784  ;;  %v155_v0 = vmov 0.0   ;;  %vm156_vm0 = vmmov 0   ;;  %v32_v1 = vld [vmem:[#allocation2] sm:$0xff]  ;;  %v33_v2 = vld [vmem:[#allocation2 + $0x8] sm:$0xff] }
  0x13   :  { %115 = vmatprep.subr.bf16.mxu0 %v155_v0  ;;  %119 = vmatprep.mubr.msk.bf16.mxu0 %vm156_vm0, %v155_v0  ;;  %v34_v3 = vld [vmem:[#allocation2 + $0x10] sm:$0xff]  ;;  %v36_v4 = vpack.c.bf16 %v33_v2, %v32_v1  ;;  %v35_v5 = vld [vmem:[#allocation2 + $0x18] sm:$0xff]  ;;  %v29_v7 = vld [vmem:[%s204_s0] sm:$0xff]  ;;  %vm45_vm1 = vcmask 261120   ;;  %vm98_vm2 = vcmask 781312  }
  0x14   :  { %v37_v6 = vpack.c.bf16 %v35_v5, %v34_v3  ;;  %v30_v8 = vld [vmem:[%s204_s0 + $0x8] sm:$0xff]  ;;  %v106_v10 = vld [vmem:[%s206_s2] ss:$0 sm:$0xff] }
  0x15   :  { %116 = vmatpush3.bf16.msra.mxu0 %v36_v4  ;;  %v31_v9 = vpack.c.bf16 %v30_v8, %v29_v7 }
  0x16   :  { %117 = vmatprep.subr.bf16.mxu0 %v155_v0 }
  0x19   :  { %118 = vmatpush3.bf16.msra.mxu0 %v37_v6 }
  0x1c   :  { %120 = vmatmul.mubr.msk.bf16.vlgmr.msra.gmra.mrb[0].mxu0 %vm45_vm1, %v31_v9 }
  0xef   :  { %v83_v11 = vpop.f32.mrb[0].mxu0 }
  0xf0   :  { %v84_v12 = vadd.f32 %v106_v10, %v83_v11  ;;  %v121_v13 = vpop.f32.mrb[1].mxu0 }
  0xf1   :  { %v86_v14 = vpop.f32.mrb[2].mxu0 }
  0xf2   :  { %v110_v15 = vpack.c.bf16 %v84_v12, %v84_v12  ;;  %v87_v16 = vadd.f32 %v106_v10, %v86_v14  ;;  %v122_v17 = vpop.f32.mrb[3].mxu0 }
  0xf4   :  { %99 = vst.msk [vmem:[%s207_s3] sm:$0xf] %vm98_vm2, %v110_v15  ;;  %v111_v18 = vpack.c.bf16 %v87_v16, %v87_v16 }
  0xf6   :  { %100 = vst.msk [vmem:[%s207_s3 + $0x4] sm:$0xf] %vm98_vm2, %v111_v18 }
  0xf7   :  { %105 = vsyncpa [#allocation3], 1 }

// kernel: mhsa_forward.4
= control target key start
LH: loop header
LB: loop body
LE: loop exit
PB: predicated region body
PF: predicated region fallthrough
CT: control target
= control target key end

     0   :  { %s548_s12 = smov 0   ;;  %s550_s13 = smov 0   ;;  %s598_s0 = inlined_call_operand.vmem [shape: bf16[8,8,8], index: 0, kind: input, shape index: {}]   ;;  %s599_s1 = inlined_call_operand.vmem [shape: bf16[8,8,8], index: 1, kind: input, shape index: {}]   ;;  %s600_s2 = inlined_call_operand.vmem [shape: bf16[8,8,8], index: 2, kind: input, shape index: {}]   ;;  %s601_s3 = inlined_call_operand.vmem [shape: bf16[8,8,8], index: 3, kind: output, shape index: {}]  }
   0x1   :  { %s552_s14 = smov 0  }
   0x2 LB: > { %s25_s15 = sadd.s32 1, %s520_s13  ;;  %p447_p0 = scmp.ge.s32.totalorder %s524_s14, 1  ;;  %s524_s14 = sphi %s552_s14, %s13_s14   ;;  %s520_s13 = sphi %s550_s13, %s603_s13   ;;  %s516_s12 = sphi %s548_s12, %s602_s12  }
   0x3   : > { %p27_p1 = scmp.ge.s32.totalorder %s25_s15, 8  ;;  %p173_p2 = scmp.lt.s32.totalorder %s524_s14, 9 }
   0x5   : > { %s605_s15 = smov (%p27_p1, %s25_s15), 0  ;;  %p174_p3 = pnand %p447_p0, %p173_p2 }
   0x6   : > { %p209_p4 = scmp.lt.s32.totalorder (!%p174_p3), %s516_s12, 7  ;;  %v526_v0 = vmov (!%p174_p3), 0.0   ;;  %vm527_vm0 = vmmov (!%p174_p3), 0   ;;  %vm235_vm1 = vcmask (!%p174_p3), 64512   ;;  %vm298_vm2 = vcmask (!%p174_p3), 1043456  }
   0x7   : > { %177 = sbr.rel (%p174_p3) target bundleno = 771 (0x303), region = 32  ;;  %460 = vmatprep.subr.bf16.mxu0 (!%p174_p3), %v526_v0  ;;  %462 = vmatprep.mubr.msk.bf16.mxu0 (!%p174_p3), %vm527_vm0, %v526_v0  ;;  %vm343_vm3 = vcmask (!%p174_p3), 60416  }
   0x8   : > { %466 = vmatprep.subr.bf16.mxu1 (!%p174_p3), %v526_v0  ;;  %468 = vmatprep.mubr.msk.bf16.mxu1 (!%p174_p3), %vm527_vm0, %v526_v0 }
   0xe   : > { %s607_s12 = smov (!%p209_p4, %s516_s12), 7 }
   0xf   : > { %s566_s16 = sshll.u32 %s607_s12, 2 }
  0x10   : > { %s219_s19 = scalar_lea.vmem %s599_s1, %s566_s16  ;;  %s215_s22 = scalar_lea.vmem %s598_s0, %s566_s16 }
  0x11   : > { %v233_v1 = vld [vmem:[%s219_s19] sm:$0xf]  ;;  %s223_s25 = scalar_lea.vmem %s600_s2, %s566_s16  ;;  %s230_s28 = scalar_lea.vmem %s601_s3, %s566_s16 }
  0x12   : > { %v240_v2 = vsel %vm235_vm1, %v233_v1, 0  ;;  %v232_v3 = vld [vmem:[%s215_s22] sm:$0xf] }
  0x13   : > { %461 = vmatpush3.bf16.xpose.msra.mxu0 %v240_v2  ;;  %v234_v15 = vld [vmem:[%s223_s25] sm:$0xf] }
  0x14   : > { %v300_v16 = vsel %vm298_vm2, %v234_v15, 0 }
  0x15   : > { %467 = vmatpush3.bf16.msra.mxu1 %v300_v16 }
  0x1a   : > { %463 = vmatmul.mubr.msk.bf16.vlgmr.msra.gmra.mrb[0].mxu0 %vm235_vm1, %v232_v3 }
  0xed   : > { %v276_v4 = vpop.f32.mrb[0].mxu0 }
  0xee   : > { %v282_v5 = vmul.f32 0.35355338, %v276_v4  ;;  %v464_v6 = vpop.f32.mrb[1].mxu0 }
  0xef   : > { %v279_v7 = vpop.f32.mrb[2].mxu0 }
  0xf0   : > { %v465_v8 = vpop.f32.mrb[3].mxu0  ;;  %v283_v9 = vsel %vm235_vm1, %v282_v5, -inf }
  0xf1   : > { %284 = vmax.xlane.f32.xlu0 %v283_v9 }
 0x17e   : > { %v285_v10 = vpop.xlane.xlu0 %284 }
 0x17f   : > { %v286_v11 = vsub.f32 %v282_v5, %v285_v10 }
 0x181   : > { %v287_v12 = vmul.f32 1.442695, %v286_v11 }
 0x183   : > { %498 = vpow2.f32 %v287_v12 }
 0x18d   : > { %v499_v13 = vpop.eup %498 }
 0x18e   : > { %v289_v14 = vsel %vm235_vm1, %v499_v13, 0.0 }
 0x18f   : > { %290 = vadd.xlane.f32.xlu0 %v289_v14 }
 0x21c   : > { %v291_v17 = vpop.xlane.xlu0 %290 }
 0x21d   : > { %500 = vrcp.f32 %v291_v17 }
 0x227   : > { %v501_v18 = vpop.eup %500 }
 0x228   : > { %v293_v19 = vmul.f32 %v501_v18, %v499_v13 }
 0x22a   : > { %v294_v20 = vpack.c.bf16 %v293_v19, %v293_v19 }
 0x22c   : > { %469 = vmatmul.mubr.msk.bf16.vlgmr.msra.gmra.mrb[0].mxu1 %vm235_vm1, %v294_v20 }
 0x2ff   : > { %v336_v21 = vpop.f32.mrb[0].mxu1 }
 0x300   : > { %v342_v22 = vpack.c.bf16 %v336_v21, %v336_v21  ;;  %v470_v23 = vpop.f32.mrb[1].mxu1 }
 0x301   : > { %v339_v24 = vpop.f32.mrb[2].mxu1 }
 0x302   : > { %344 = vst.msk [vmem:[%s230_s28] sm:$0xf] %vm343_vm3, %v342_v22  ;;  %v471_v25 = vpop.f32.mrb[3].mxu1 }
 0x303 PF: > { %s13_s14 = sadd.s32 1, %s524_s14   ;;  %s602_s12 = smov %s520_s13 }
 0x304   : > { %p10_p5 = scmp.ge.s32.totalorder %s13_s14, 10   ;;  %s603_s13 = smov %s605_s15 }
 0x306   :  { %12 = sbr.rel (!%p10_p5) target bundleno = 2 (0x2), region = 68 }

// kernel: mhsa_forward.5
= control target key start
LH: loop header
LB: loop body
LE: loop exit
PB: predicated region body
PF: predicated region fallthrough
CT: control target
= control target key end

     0   :  { %v192_v3 = vmov 0.0   ;;  %vm193_vm0 = vmmov 0   ;;  %s265_s0 = inlined_call_operand.vmem [shape: bf16[16,32], index: 0, kind: input, shape index: {}]   ;;  %s266_s1 = inlined_call_operand.vmem [shape: f32[16,32], index: 1, kind: input, shape index: {}]   ;;  %s267_s2 = inlined_call_operand.vmem [shape: f32[32,32], index: 2, kind: input, shape index: {}]   ;;  %s268_s3 = inlined_call_operand.vmem [shape: f32[3,32], index: 3, kind: input, shape index: {}]   ;;  %s269_s4 = inlined_call_operand.hbm [shape: f32[16,32], index: 4, kind: output, shape index: {}]  }
   0x1   :  { %v19_v0 = vld [vmem:[%s267_s2] sm:$0xff]  ;;  %v20_v1 = vld [vmem:[%s267_s2 + $0x8] sm:$0xff]  ;;  %v21_v2 = vld [vmem:[%s267_s2 + $0x10] sm:$0xff]  ;;  %150 = vmatprep.subr.bf16.mxu0 %v192_v3  ;;  %154 = vmatprep.mubr.msk.bf16.mxu0 %vm193_vm0, %v192_v3 }
   0x2   :  { %v23_v4 = vpack.c.bf16 %v20_v1, %v19_v0  ;;  %v22_v5 = vld [vmem:[%s267_s2 + $0x18] sm:$0xff] }
   0x3   :  { %9 = vsyncpa [#allocation3], 0  ;;  %v24_v6 = vpack.c.bf16 %v22_v5, %v21_v2  ;;  %v163_v7 = vld [vmem:[%s265_s0] sm:$0xff]   ;;  %vm32_vm1 = vcmask 261120   ;;  %v82_v8 = vlaneseq  ;;  %v79_v19 = vld [vmem:[%s266_s1 + $0x8] sm:$0xff] }
   0x4   :  { %151 = vmatpush3.bf16.msra.mxu0 %v23_v4  ;;  %v77_v12 = vld [vmem:[%s268_s3] sm:$0x7] }
   0x5   :  { %152 = vmatprep.subr.bf16.mxu0 %v192_v3  ;;  %v83_v9 = vshrl.u32 %v82_v8, 7  ;;  %v78_v16 = vld [vmem:[%s266_s1] sm:$0xff]  ;;  %s194_s1 = smov [#allocation2]  }
   0x6   :  { %s134_s3 = sshll.u32 %s194_s1, 4  ;;  %s135_s3 = int_to_ptr.vmem [resolvable:$true] %s134_s3 }
   0x7   :  { %v117_v10 = vsub.s32 1, %v83_v9  ;;  %v123_v11 = vsub.s32 2, %v83_v9  ;;  %v84_v15 = vsub.s32 0, %v83_v9  ;;  %s168_s29 = scalar_lea.vmem %s135_s3, 256  ;;  %p173_p1 = scmp.lt.s32.totalorder %s135_s3, %s135_s3 }
   0x8   :  { %153 = vmatpush3.bf16.msra.mxu0 %v24_v6  ;;  %p169_p0 = scmp.ne.s32.totalorder %s135_s3, %s168_s29  ;;  %p174_p2 = scmp.lt.s32.totalorder %s168_s29, %s168_s29 }
   0x9   :  { %v118_v13 = vrot.slane %v77_v12, %v117_v10  ;;  %v124_v14 = vrot.slane %v77_v12, %v123_v11  ;;  %v85_v17 = vrot.slane %v77_v12, %v84_v15 }
   0xa   :  { %p175_p3 = por %p174_p2, %p173_p1 }
   0xb   :  { %155 = vmatmul.mubr.msk.bf16.vlgmr.msra.gmra.mrb[0].mxu0 %vm32_vm1, %v163_v7 }
   0xc   :  { %p176_p4 = pnand %p175_p3, %p169_p0 }
  0xde   :  { %v70_v18 = vpop.f32.mrb[0].mxu0 }
  0xdf   :  { %v80_v20 = vadd.f32 %v78_v16, %v70_v18  ;;  %v156_v21 = vpop.f32.mrb[1].mxu0 }
  0xe0   :  { %v73_v22 = vpop.f32.mrb[2].mxu0 }
  0xe1   :  { %v81_v23 = vadd.f32 %v79_v19, %v73_v22  ;;  %v157_v24 = vpop.f32.mrb[3].mxu0  ;;  %v86_v25 = vadd.f32 %v85_v17, %v80_v20 }
  0xe3   :  { %v88_v26 = vsel %vm32_vm1, %v86_v25, 0.0  ;;  %v87_v27 = vadd.f32 %v85_v17, %v81_v23 }
  0xe4   :  { %89 = vadd.xlane.f32.xlu0 %v88_v26 }
  0xe5   :  { %v91_v28 = vsel %vm32_vm1, %v87_v27, 0.0 }
  0xe8   :  { %92 = vadd.xlane.f32.xlu0 %v91_v28 }
 0x171   :  { %v90_v29 = vpop.xlane.xlu0 %89 }
 0x172   :  { %v95_v30 = vmul.f32 0.03125, %v90_v29 }
 0x174   :  { %v97_v31 = vsub.f32 %v86_v25, %v95_v30 }
 0x175   :  { %v93_v32 = vpop.xlane.xlu0 %92 }
 0x176   :  { %v96_v33 = vmul.f32 0.03125, %v93_v32  ;;  %v99_v34 = vmul.f32 %v97_v31, %v97_v31 }
 0x178   :  { %v98_v35 = vsub.f32 %v87_v27, %v96_v33  ;;  %v101_v36 = vsel %vm32_vm1, %v99_v34, 0.0 }
 0x179   :  { %102 = vadd.xlane.f32.xlu1 %v101_v36 }
 0x17a   :  { %v100_v37 = vmul.f32 %v98_v35, %v98_v35 }
 0x17c   :  { %v104_v38 = vsel %vm32_vm1, %v100_v37, 0.0 }
 0x17d   :  { %105 = vadd.xlane.f32.xlu1 %v104_v38 }
 0x206   :  { %v103_v39 = vpop.xlane.xlu1 %102 }
 0x207   :  { %v107_v40 = vmul.f32 0.03125, %v103_v39 }
 0x209   :  { %v109_v41 = vadd.f32 1e-05, %v107_v40 }
 0x20a   :  { %v106_v42 = vpop.xlane.xlu1 %105 }
 0x20b   :  { %164 = vrsqrt.f32 %v109_v41  ;;  %v108_v43 = vmul.f32 0.03125, %v106_v42 }
 0x20d   :  { %v110_v44 = vadd.f32 1e-05, %v108_v43 }
 0x20f   :  { %166 = vrsqrt.f32 %v110_v44 }
 0x215   :  { %v165_v45 = vpop.eup %164 }
 0x216   :  { %v113_v46 = vmul.f32 %v165_v45, %v97_v31 }
 0x218   :  { %v119_v47 = vmul.f32 %v118_v13, %v113_v46 }
 0x219   :  { %v167_v48 = vpop.eup %166 }
 0x21a   :  { %v114_v49 = vmul.f32 %v167_v48, %v98_v35  ;;  %v125_v50 = vadd.f32 %v124_v14, %v119_v47 }
 0x21c   :  { %v120_v51 = vmul.f32 %v118_v13, %v114_v49  ;;  %127 = vst.msk [vmem:[#allocation2] sm:$0xff] %vm32_vm1, %v125_v50 }
 0x21e   :  { %v126_v52 = vadd.f32 %v124_v14, %v120_v51 }
 0x220   :  { %128 = vst.msk [vmem:[#allocation2 + $0x8] sm:$0xff] %vm32_vm1, %v126_v52 }
 0x221   :  { %179 = shalt.err (!%p176_p4)
}
 0x222   :  { %s180_s6 = scalar_lea.hbm %s269_s4, 256 }
 0x223   :  { %p181_p5 = scmp.ne.s32.totalorder %s269_s4, %s180_s6  ;;  %p184_p6 = scmp.lt.u32.totalorder %s180_s6, %s269_s4 }
 0x225   :  { %p186_p7 = pnand %p184_p6, %p181_p5 }
 0x227   :  { %189 = shalt.err (!%p186_p7)
}
 0x228   :  { %s195_s11 = smov 128   ;;  %s196_s12 = smov 8  }
 0x229   :  { %140 = dma.vmem_to_hbm [thread:$0]  %s135_s3, 256, %s269_s4, [#allocation3], %s195_s11, %s195_s11, %s196_s12  }
 0x22a   :  { %190 = dma.done.wait [#allocation3], 256  }
 0x22b   :  { %191 = vsyncadd [#allocation3], 4294967040 }
 0x22c   :  { %144 = vsyncpa [#allocation3], 1 }

</bundles_post_ra>
